<compile_context>
chip_gen: v6e
topology: v6e:2x2x1
jax: 0.10.0
libtpu: 0.0.40
codegen_flags: <defaults>
</compile_context>

<pallas_src>
import math
import numpy as np
import jax
import jax.numpy as jnp
from jax.experimental import pallas as pl
from jax.experimental.pallas import tpu as pltpu


# ----------------------------------------------------------------------------
# Fused BN(eval) -> ReLU -> 1x1 conv (no bias) Pallas kernel
# ----------------------------------------------------------------------------
def _bn_relu_conv_kernel(x_ref, scale_ref, shift_ref, w_ref, o_ref):
    # BN folded into scale/shift, ReLU in f32 on the VPU, then one MXU matmul
    # over the full Cin with bf16 operands and f32 accumulation.
    h = jnp.maximum(x_ref[...] * scale_ref[...] + shift_ref[...], 0.0)
    o_ref[...] = jnp.dot(
        h.astype(jnp.bfloat16), w_ref[...],
        preferred_element_type=jnp.float32).astype(o_ref.dtype)


def bn_relu_conv1x1_nhwc(x_nhwc, gamma, beta, mean, var, conv_w, eps=1e-5):
    """BN(eval) -> ReLU -> Conv2d(k=1, bias=False) on NHWC input.

    (N,H,W,Cin) -> (N,H,W,Cout).  Channels must be multiples of 128.
    """
    n, h, w, cin = x_nhwc.shape
    cout = conv_w.shape[0]
    assert cin % 128 == 0 and cout % 128 == 0, "channels must be multiples of 128"

    scale = gamma / jnp.sqrt(var + eps)                       # (Cin,)
    shift = beta - mean * scale                               # (Cin,)
    # Pre-cast weights to bf16: halves weight DMA, MXU-native operand dtype.
    w_mat = conv_w.reshape(cout, cin).T.astype(jnp.bfloat16)  # (Cin, Cout)

    x_flat = x_nhwc.reshape(n * h * w, cin)
    m = n * h * w

    # Fixed M tile; never tie tm to the full row count for large M.
    max_tm = 256
    if m <= max_tm:
        m_pad = -(-m // 8) * 8          # tiny pyramid levels: one full-M tile
        tm = m_pad
    else:
        tm = max_tm
        m_pad = -(-m // tm) * tm
    if m_pad != m:
        x_flat = jnp.pad(x_flat, ((0, m_pad - m), (0, 0)))

    grid = (m_pad // tm,)               # K and N axes are collapsed (full extent)

    out = pl.pallas_call(
        _bn_relu_conv_kernel,
        out_shape=jax.ShapeDtypeStruct((m_pad, cout), x_nhwc.dtype),
        grid_spec=pltpu.PrefetchScalarGridSpec(
            num_scalar_prefetch=0,
            grid=grid,
            in_specs=[
                pl.BlockSpec((tm, cin), lambda i: (i, 0)),     # activation tile
                pl.BlockSpec((1, cin), lambda i: (0, 0)),      # BN scale
                pl.BlockSpec((1, cin), lambda i: (0, 0)),      # BN shift
                pl.BlockSpec((cin, cout), lambda i: (0, 0)),   # full weight slab
            ],
            out_specs=pl.BlockSpec((tm, cout), lambda i: (i, 0)),
        ),
        compiler_params=pltpu.CompilerParams(
            dimension_semantics=("parallel",)),
    )(x_flat, scale.reshape(1, cin), shift.reshape(1, cin), w_mat)

    return out[:m].reshape(n, h, w, cout)


# Pure-JAX reference of the same fused block (used for a correctness check).
def ref_bn_relu_conv1x1_nhwc(x_nhwc, gamma, beta, mean, var, conv_w, eps=1e-5):
    scale = gamma / jnp.sqrt(var + eps)
    shift = beta - mean * scale
    h = jnp.maximum(x_nhwc * scale + shift, 0.0)
    w2d = conv_w.reshape(conv_w.shape[0], conv_w.shape[1])    # (Cout, Cin)
    return jnp.einsum('nhwc,oc->nhwo', h, w2d)


# ----------------------------------------------------------------------------
# Separable linear resampling matrices (adaptive avg pool / bilinear upsample)
# ----------------------------------------------------------------------------
def adaptive_pool_matrix(in_size, out_size):
    """Row-stochastic matrix (out_size, in_size) matching F.adaptive_avg_pool2d."""
    mat = np.zeros((out_size, in_size), np.float32)
    for i in range(out_size):
        start = (i * in_size) // out_size
        end = -(-((i + 1) * in_size) // out_size)  # ceil
        mat[i, start:end] = 1.0 / (end - start)
    return jnp.asarray(mat)


def bilinear_matrix(in_size, out_size):
    """(out_size, in_size) matrix matching F.interpolate(mode='bilinear',
    align_corners=False)."""
    mat = np.zeros((out_size, in_size), np.float32)
    scale = in_size / out_size
    for i in range(out_size):
        src = (i + 0.5) * scale - 0.5
        src = max(src, 0.0)
        x0 = min(int(math.floor(src)), in_size - 1)
        x1 = min(x0 + 1, in_size - 1)
        lam = src - x0
        mat[i, x0] += 1.0 - lam
        mat[i, x1] += lam
    return jnp.asarray(mat)


# ----------------------------------------------------------------------------
# SpatialPyramidPooling forward (NCHW in/out, NHWC internally)
# ----------------------------------------------------------------------------
def spatial_pyramid_pooling(x, params, grids, num_levels, square_grid=False,
                            conv=bn_relu_conv1x1_nhwc):
    n, c, h, w = x.shape
    ar = w / h
    x = jnp.transpose(x, (0, 2, 3, 1))            # single NCHW -> NHWC transpose
    x = conv(x, *params['spp_bn'])
    levels = [x]
    # TODO(synk): the four tiny level convs could be fused into one grouped
    # matmul (row-concat + scalar-prefetched per-level weight index), but each
    # is already a single-grid-step Pallas call with no layout transposes.
    for i in range(num_levels):
        g = grids[i]
        if square_grid:
            gh, gw = g, g
        else:
            gh, gw = g, max(1, round(ar * g))
        ph = adaptive_pool_matrix(h, gh)
        pw = adaptive_pool_matrix(w, gw)
        x_pooled = jnp.einsum('nhwc,ih,jw->nijc', x, ph, pw)
        lvl = conv(x_pooled, *params[f'spp{i}'])
        uh = bilinear_matrix(gh, h)
        uw = bilinear_matrix(gw, w)
        lvl = jnp.einsum('nijc,hi,wj->nhwc', lvl, uh, uw)
        levels.append(lvl)
    cat = jnp.concatenate(levels, axis=-1)
    out = conv(cat, *params['spp_fuse'])
    return jnp.transpose(out, (0, 3, 1, 2))       # single NHWC -> NCHW transpose


# ----------------------------------------------------------------------------
# Deterministic synthetic parameter init
# ----------------------------------------------------------------------------
def init_bn_relu_conv(key, cin, cout):
    k1, k2, k3, k4, k5 = jax.random.split(key, 5)
    gamma = 1.0 + 0.1 * jax.random.normal(k1, (cin,), jnp.float32)
    beta = 0.1 * jax.random.normal(k2, (cin,), jnp.float32)
    mean = 0.1 * jax.random.normal(k3, (cin,), jnp.float32)
    var = jax.random.uniform(k4, (cin,), jnp.float32, 0.5, 1.5)
    wconv = jax.random.normal(k5, (cout, cin, 1, 1), jnp.float32) / np.sqrt(cin)
    return (gamma, beta, mean, var, wconv)


if __name__ == "__main__":
    # Small, tiling-friendly configuration (bt_size scaled down from 512).
    num_maps_in, bt_size, level_size, out_size = 128, 256, 128, 128
    num_levels = 4
    grids = (6, 3, 2, 1)
    N, H, W = 2, 16, 16

    key = jax.random.PRNGKey(0)
    keys = jax.random.split(key, num_levels + 3)

    params = {'spp_bn': init_bn_relu_conv(keys[0], num_maps_in, bt_size)}
    for i in range(num_levels):
        params[f'spp{i}'] = init_bn_relu_conv(keys[1 + i], bt_size, level_size)
    final_size = bt_size + num_levels * level_size
    params['spp_fuse'] = init_bn_relu_conv(keys[num_levels + 1], final_size, out_size)

    x = jax.random.normal(keys[-1], (N, num_maps_in, H, W), jnp.float32)

    out = spatial_pyramid_pooling(x, params, grids, num_levels,
                                  conv=bn_relu_conv1x1_nhwc)
    out = jax.block_until_ready(out)
    assert out.shape == (N, out_size, H, W), out.shape

    ref = spatial_pyramid_pooling(x, params, grids, num_levels,
                                  conv=ref_bn_relu_conv1x1_nhwc)
    ref = jax.block_until_ready(ref)

    rel_err = float(jnp.max(jnp.abs(out - ref)) / (jnp.max(jnp.abs(ref)) + 1e-6))
    if rel_err < 3e-2:
        print("KERNEL_OK")
    else:
        print(f"MISMATCH rel_err={rel_err}")
</pallas_src>

<mosaic_0001>
module attributes {stable_mosaic.version = 11 : i64} {
  func.func @_bn_relu_conv_kernel(%arg0: i32, %arg1: memref<256x128xf32, #tpu.memory_space<vmem>>, %arg2: memref<1x128xf32, #tpu.memory_space<vmem>>, %arg3: memref<1x128xf32, #tpu.memory_space<vmem>>, %arg4: memref<128x256xbf16, #tpu.memory_space<vmem>>, %arg5: memref<256x256xf32, #tpu.memory_space<vmem>>) attributes {dimension_semantics = [#tpu.dimension_semantics<parallel>], iteration_bounds = array<i64: 2>, scalar_prefetch = 0 : i64, scratch_operands = 0 : i64, tpu.core_type = #tpu.core_type<tc>, window_params = [{transform_indices = @transform_0, window_bounds = array<i64: 256, 128>}, {pipeline_mode = #tpu.pipeline_mode<synchronous>, transform_indices = @transform_1, window_bounds = array<i64: 1, 128>}, {pipeline_mode = #tpu.pipeline_mode<synchronous>, transform_indices = @transform_2, window_bounds = array<i64: 1, 128>}, {pipeline_mode = #tpu.pipeline_mode<synchronous>, transform_indices = @transform_3, window_bounds = array<i64: 128, 256>}, {transform_indices = @transform_4, window_bounds = array<i64: 256, 256>}]} {
    %c0 = arith.constant 0 : index
    %c0_0 = arith.constant 0 : index
    %0 = vector.load %arg1[%c0, %c0_0] : memref<256x128xf32, #tpu.memory_space<vmem>>, vector<256x128xf32>
    %c0_1 = arith.constant 0 : index
    %c0_2 = arith.constant 0 : index
    %1 = vector.load %arg2[%c0_1, %c0_2] : memref<1x128xf32, #tpu.memory_space<vmem>>, vector<1x128xf32>
    %2 = vector.broadcast %1 : vector<1x128xf32> to vector<256x128xf32>
    %3 = arith.mulf %0, %2 : vector<256x128xf32>
    %c0_3 = arith.constant 0 : index
    %c0_4 = arith.constant 0 : index
    %4 = vector.load %arg3[%c0_3, %c0_4] : memref<1x128xf32, #tpu.memory_space<vmem>>, vector<1x128xf32>
    %5 = vector.broadcast %4 : vector<1x128xf32> to vector<256x128xf32>
    %6 = arith.addf %3, %5 : vector<256x128xf32>
    %cst = arith.constant 0.000000e+00 : f32
    %7 = vector.broadcast %cst : f32 to vector<256x128xf32>
    %8 = arith.maximumf %6, %7 : vector<256x128xf32>
    %9 = arith.truncf %8 : vector<256x128xf32> to vector<256x128xbf16>
    %c0_5 = arith.constant 0 : index
    %c0_6 = arith.constant 0 : index
    %10 = vector.load %arg4[%c0_5, %c0_6] : memref<128x256xbf16, #tpu.memory_space<vmem>>, vector<128x256xbf16>
    %cst_7 = arith.constant dense<0.000000e+00> : vector<256x256xf32>
    %11 = tpu.matmul %9, %10, %cst_7 {dimension_numbers = #tpu.dot_dimension_numbers<[1], [0], [0], [1], [0, 0, 1, 1], [], []>} : vector<256x128xbf16>, vector<128x256xbf16>, vector<256x256xf32> -> vector<256x256xf32>
    %c0_8 = arith.constant 0 : index
    %c0_9 = arith.constant 0 : index
    %12 = vector.load %arg5[%c0_8, %c0_9] : memref<256x256xf32, #tpu.memory_space<vmem>>, vector<256x256xf32>
    tpu.vector_store %arg5[%c0_8, %c0_9], %11 {strides = array<i32>} : memref<256x256xf32, #tpu.memory_space<vmem>>, vector<256x256xf32>,
    return
  }
  func.func @transform_0(%arg0: i32) -> (i32, i32) {
    %c0_i32 = arith.constant 0 : i32
    %c0_i32_0 = arith.constant 0 : i32
    return %arg0, %c0_i32 : i32, i32
  }
  func.func @transform_1(%arg0: i32) -> (i32, i32) {
    %c0_i32 = arith.constant 0 : i32
    %c0_i32_0 = arith.constant 0 : i32
    %c0_i32_1 = arith.constant 0 : i32
    return %c0_i32, %c0_i32_0 : i32, i32
  }
  func.func @transform_2(%arg0: i32) -> (i32, i32) {
    %c0_i32 = arith.constant 0 : i32
    %c0_i32_0 = arith.constant 0 : i32
    %c0_i32_1 = arith.constant 0 : i32
    return %c0_i32, %c0_i32_0 : i32, i32
  }
  func.func @transform_3(%arg0: i32) -> (i32, i32) {
    %c0_i32 = arith.constant 0 : i32
    %c0_i32_0 = arith.constant 0 : i32
    %c0_i32_1 = arith.constant 0 : i32
    return %c0_i32, %c0_i32_0 : i32, i32
  }
  func.func @transform_4(%arg0: i32) -> (i32, i32) {
    %c0_i32 = arith.constant 0 : i32
    %c0_i32_0 = arith.constant 0 : i32
    return %arg0, %c0_i32 : i32, i32
  }
}

</mosaic_0001>

<bundles_post_ra>
// kernel: tpu_custom_call.1
= control target key start
LH: loop header
LB: loop body
LE: loop exit
PB: predicated region body
PF: predicated region fallthrough
CT: control target
= control target key end

     0   :  { %9 = vsyncpa [#allocation3], 0  ;;  %s1515_s0 = inlined_call_operand.hbm [shape: f32[512,128], index: 0, kind: input, shape index: {}]   ;;  %s1516_s1 = inlined_call_operand.vmem [shape: f32[1,128], index: 1, kind: input, shape index: {}]   ;;  %s1517_s2 = inlined_call_operand.vmem [shape: f32[1,128], index: 2, kind: input, shape index: {}]   ;;  %s1518_s3 = inlined_call_operand.hbm [shape: bf16[128,256], index: 3, kind: input, shape index: {}]   ;;  %s1519_s4 = inlined_call_operand.hbm [shape: f32[512,256], index: 4, kind: output, shape index: {}]  }
   0x1   :  { %11 = vsyncpa [#allocation3 + $0x1], 0 }
   0x2   :  { %12 = vsyncpa [#allocation6], 0 }
   0x3   :  { %13 = vsyncpa [#allocation4], 0 }
   0x4   :  { %15 = vsyncpa [#allocation4 + $0x1], 0  ;;  %s1140_s15 = smov 0   ;;  %s1142_s16 = smov 0  }
   0x5   :  { %s1144_s17 = smov 0   ;;  %s1146_s18 = smov 0  }
   0x6 LB: > { %s1161_s19 = sadd.s32 4294967295, %s1105_s18   ;;  %s843_s20 = sadd.s32 4294967294, %s1105_s18   ;;  %s1105_s18 = sphi %s1146_s18, %s1541_s18   ;;  %s1101_s17 = sphi %s1144_s17, %s1540_s17   ;;  %s1097_s16 = sphi %s1142_s16, %s1539_s16   ;;  %s1093_s15 = sphi %s1140_s15, %s1538_s15  }
   0x7   : > { %p41_p0 = scmp.ne.s32.totalorder %s1097_s16, %s1093_s15  ;;  %p1520_p1 = scmp.eq.s32.totalorder %s1161_s19, 0 }
   0x8   : > { %p134_p3 = scmp.eq.s32.totalorder %s843_s20, 1  ;;  %p844_p5 = scmp.ge.s32.totalorder %s1105_s18, 1 }
   0x9   : > { %p1170_p4 = por %p1520_p1, %p41_p0  ;;  %p141_p7 = scmp.lt.s32.totalorder %s1105_s18, 3 }
   0xa   : > { %p1175_p6 = por %p134_p3, %p41_p0  ;;  %s1107_s24 = smov [#allocation5]  }
   0xb   : > { %s1524_s21 = scalar_select %p1170_p4, 1, 0 }
   0xc   : > { %s1525_s22 = scalar_select %p1175_p6, 1, 0 }
   0xd   : > { %p1180_p8 = pnand %p844_p5, %p141_p7  ;;  %s159_s25 = sshll.u32 %s1107_s24, 4  ;;  %s160_s25 = int_to_ptr.vmem [resolvable:$true] %s159_s25 }
   0xe   : > { %s1194_s27 = sadd.s32 1, %s1105_s18   ;;  %s28_s28 = sadd.s32 1, %s1101_s17 }
   0xf   : > { %s1526_s23 = scalar_select %p1180_p8, 1, 0 }
  0x10   : > { %p905_p9 = pneg %p1180_p8  ;;  %s25_s29 = ssub.s32 %s1105_s18, %s1194_s27 }
  0x11   : > { %s994_s30 = scalar_lea.vmem %s160_s25, 2048  ;;  %p1002_p5 = scmp.lt.s32.totalorder %s160_s25, %s160_s25 }
  0x12   : > { %p1189_p11 = pnand %p905_p9, %p1520_p1  ;;  %p995_p13 = scmp.ne.s32.totalorder %s160_s25, %s994_s30 }
  0x13   : > { %p1003_p7 = scmp.lt.s32.totalorder %s994_s30, %s994_s30 }
  0x14   : > { %p985_p12 = pneg %p1189_p11 }
  0x15   : > { %p1004_p10 = por %p1003_p7, %p1002_p5 }
  0x16   : > { %p997_p0 = pnand %p995_p13, %p985_p12 }
  0x18   : > { %p998_p3 = pneg %p997_p0 }
  0x1a   : > { %p1005_p2 = pnand %p1004_p10, %p998_p3 }
  0x1c   : > { %1008 = shalt.err (!%p1005_p2)
}
  0x1d   : > { %s1108_s5 = smov 128   ;;  %s1109_s6 = smov 8  }
  0x1e   : > { %908 = dma.hbm_to_vmem [thread:$0]  (!%p1189_p11), %s1518_s3, 2048, %s160_s25, [#allocation6], %s1108_s5, %s1108_s5, %s1109_s6  }
  0x1f   : > { %p26_p2 = scmp.eq.s32.totalorder %s25_s29, 0  ;;  %p35_p9 = scmp.ne.s32.totalorder %s1101_s17, %s1097_s16 }
  0x20   : > { %p36_p10 = scmp.eq.s32.totalorder %s1105_s18, 0  ;;  %p918_p12 = scmp.lt.s32.totalorder %s1105_s18, 2 }
  0x21   : > { %s1214_s9 = scalar_select %p26_p2, %s1101_s17, %s28_s28  }
  0x22   : > { %p37_p13 = por %p36_p10, %p35_p9  ;;  %p1528_p0 = scmp.eq.s32.totalorder %s1161_s19, 1 }
  0x23   : > { %s173_s11 = sand.u32 1, %s1101_s17   ;;  %s878_s12 = sshll.u32 %s1105_s18, 12 }
  0x24   : > { %p1218_p3 = por %p1528_p0, %p35_p9  ;;  %s847_s13 = sshll.u32 %s173_s11, 8 }
  0x25   : > { %s1227_s24 = scalar_lea.hbm %s1515_s0, %s878_s12  ;;  %s177_s25 = scalar_lea.vmem [#allocation2], %s847_s13 }
  0x26   : > { %s1529_s10 = scalar_select %p1218_p3, 1, 0 }
  0x27   : > { %s184_s26 = sshll.u32 %s177_s25, 4  ;;  %p1229_p11 = pnand %p918_p12, %p37_p13  ;;  %s1233_s26 = int_to_ptr.vmem [resolvable:$true] %s184_s26 }
  0x28   : > { %s1235_s29 = scalar_lea.sflag [#allocation3], %s173_s11  ;;  %s1009_s30 = scalar_lea.hbm %s1227_s24, 4096 }
  0x29   : > { %p1010_p5 = scmp.ne.s32.totalorder %s1227_s24, %s1009_s30  ;;  %p1011_p7 = pneg %p1229_p11 }
  0x2a   : > { %s1014_s12 = scalar_lea.hbm %s1515_s0, 8192  ;;  %p1015_p10 = scmp.lt.s32.totalorder %s1227_s24, %s1515_s0 }
  0x2b   : > { %p1012_p2 = pnand %p1011_p7, %p1010_p5  ;;  %p1016_p12 = scmp.lt.s32.totalorder %s1014_s12, %s1009_s30 }
  0x2d   : > { %p1013_p9 = pneg %p1012_p2  ;;  %p1017_p13 = por %p1016_p12, %p1015_p10 }
  0x2f   : > { %p1018_p0 = pnand %p1017_p13, %p1013_p9 }
  0x31   : > { %1021 = shalt.err (!%p1018_p0)
}
  0x32   : > { %s1022_s11 = scalar_lea.vmem %s1233_s26, 4096  ;;  %s1110_s20 = smov [#allocation2]  }
  0x33   : > { %p1023_p1 = scmp.ne.s32.totalorder %s1233_s26, %s1022_s11  ;;  %s1027_s25 = sshll.u32 %s1110_s20, 4  ;;  %s1028_s25 = int_to_ptr.vmem [resolvable:$false] %s1027_s25 }
  0x34   : > { %s1029_s7 = scalar_lea.vmem %s1028_s25, 8192  ;;  %p1030_p2 = scmp.lt.s32.totalorder %s1233_s26, %s1028_s25 }
  0x35   : > { %p1025_p6 = pnand %p1023_p1, %p1011_p7  ;;  %p1031_p3 = scmp.lt.s32.totalorder %s1029_s7, %s1022_s11 }
  0x37   : > { %p1026_p5 = pneg %p1025_p6  ;;  %p1032_p4 = por %p1031_p3, %p1030_p2 }
  0x39   : > { %p1033_p8 = pnand %p1032_p4, %p1026_p5 }
  0x3b   : > { %1036 = shalt.err (!%p1033_p8)
}
  0x3c   : > { %912 = dma.hbm_to_vmem [thread:$0]  (!%p1229_p11), %s1227_s24, 4096, %s1233_s26, %s1235_s29, %s1108_s5, %s1108_s5, %s1109_s6  }
  0x3d   : > { %p1531_p1 = scmp.ne.s32.totalorder %s1526_s23, 0 }
  0x3e   : > { %s1262_s30 = sand.u32 (!%p1531_p1), 1, %s1097_s16   ;;  %p1532_p4 = scmp.ne.s32.totalorder (!%p1531_p1), %s1524_s21, 0 }
  0x3f   : > { %196 = sbr.rel (%p1531_p1) target bundleno = 375 (0x177), region = 36  ;;  %s851_s8 = sshll.u32 (!%p1531_p1), %s1262_s30, 8 }
  0x40   : > { %s199_s12 = scalar_lea.sflag (!%p1531_p1), [#allocation3], %s1262_s30  ;;  %s1266_s13 = scalar_lea.vmem (!%p1531_p1), [#allocation2], %s851_s8 }
  0x44   : > { %1080 = dma.done.wait (%p1532_p4), %s199_s12, 4096  }
  0x45   : > { %1082 = vsyncadd (%p1532_p4), %s199_s12, 4294963200  ;;  %p1533_p6 = scmp.eq.s32.totalorder %s1161_s19, 0 }
  0x47   : > { %1084 = dma.done.wait (%p1533_p6), [#allocation6], 2048   ;;  %p1534_p8 = pmov %p1533_p6 }
  0x48   : > { %v1111_v0 = vmov 0   ;;  %v959_v1 = vld [vmem:[#allocation5 + $0x74] ss:$8 sps:$4 sm:$0xff]   ;;  %v961_v2 = vld [vmem:[#allocation5 + $0x70] ss:$8 sps:$4 sm:$0xff]   ;;  %v234_v11 = vld [vmem:[%s1266_s13] sm:$0xff] }
  0x49   : > { %1086 = vsyncadd (%p1534_p8), [#allocation6], 4294965248  ;;  %520 = vmatprep.mubr.bf16.mxu0 %v1111_v0  ;;  %600 = vmatprep.mubr.bf16.mxu1 %v1111_v0  ;;  %v962_v3 = vld [vmem:[#allocation5 + $0x64] ss:$8 sps:$4 sm:$0xff]   ;;  %v964_v4 = vld [vmem:[#allocation5 + $0x60] ss:$8 sps:$4 sm:$0xff]  }
  0x4a   : > { %488 = vmatprep.subr.bf16.mxu0 %v959_v1  ;;  %881 = vmatprep.subr.bf16.mxu1 %v959_v1  ;;  %v965_v5 = vld [vmem:[#allocation5 + $0x54] ss:$8 sps:$4 sm:$0xff]   ;;  %v967_v6 = vld [vmem:[#allocation5 + $0x50] ss:$8 sps:$4 sm:$0xff]   ;;  %v968_v7 = vld [vmem:[#allocation5 + $0x44] ss:$8 sps:$4 sm:$0xff]  }
  0x4b   : > { %489 = vmatpush1.bf16.msra.mxu0 %v961_v2  ;;  %889 = vmatpush1.bf16.msra.mxu1 %v961_v2  ;;  %v970_v8 = vld [vmem:[#allocation5 + $0x40] ss:$8 sps:$4 sm:$0xff]   ;;  %v971_v9 = vld [vmem:[#allocation5 + $0x34] ss:$8 sps:$4 sm:$0xff]   ;;  %v973_v10 = vld [vmem:[#allocation5 + $0x30] ss:$8 sps:$4 sm:$0xff]  }
  0x4c   : > { %490 = vmatprep.subr.bf16.mxu0 %v962_v3  ;;  %882 = vmatprep.subr.bf16.mxu1 %v962_v3  ;;  %v1282_v12 = vld [vmem:[%s1516_s1] ss:$0 sm:$0xff]  ;;  %v235_v13 = vld [vmem:[%s1266_s13 + $0x8] sm:$0xff]  ;;  %v977_v23 = vld [vmem:[#allocation5 + $0x14] ss:$8 sps:$4 sm:$0xff]   ;;  %s853_s24 = sshll.u32 %s1262_s30, 9 }
  0x4d   : > { %v250_v14 = vld [vmem:[%s1266_s13 + $0x80] sm:$0xff]  ;;  %v251_v15 = vld [vmem:[%s1266_s13 + $0x88] sm:$0xff]  ;;  %v273_v17 = vmul.f32 %v1282_v12, %v234_v11  ;;  %v274_v18 = vmul.f32 %v1282_v12, %v235_v13  ;;  %v236_v28 = vld [vmem:[%s1266_s13 + $0x10] sm:$0xff]  ;;  %s1399_s26 = scalar_lea.vmem [#allocation7], %s853_s24  ;;  %s880_s28 = sshll.u32 %s1161_s19, 13 }
  0x4e   : > { %v974_v16 = vld [vmem:[#allocation5 + $0x24] ss:$8 sps:$4 sm:$0xff]   ;;  %v1292_v19 = vld [vmem:[%s1517_s2] ss:$0 sm:$0xff]  ;;  %v289_v20 = vmul.f32 %v1282_v12, %v250_v14  ;;  %v290_v21 = vmul.f32 %v1282_v12, %v251_v15  ;;  %v237_v29 = vld [vmem:[%s1266_s13 + $0x18] sm:$0xff]  ;;  %v275_v35 = vmul.f32 %v1282_v12, %v236_v28  ;;  %s760_s29 = sshll.u32 %s1399_s26, 4  ;;  %s1466_s20 = scalar_lea.hbm %s1519_s4, %s880_s28  ;;  %s1468_s29 = int_to_ptr.vmem [resolvable:$true] %s760_s29 }
  0x4f   : > { %491 = vmatpush1.bf16.msra.mxu0 %v964_v4  ;;  %890 = vmatpush1.bf16.msra.mxu1 %v964_v4  ;;  %v976_v22 = vld [vmem:[#allocation5 + $0x20] ss:$8 sps:$4 sm:$0xff]   ;;  %v312_v24 = vadd.f32 %v1292_v19, %v273_v17  ;;  %v313_v25 = vadd.f32 %v1292_v19, %v274_v18  ;;  %v252_v30 = vld [vmem:[%s1266_s13 + $0x90] sm:$0xff]  ;;  %v253_v32 = vld [vmem:[%s1266_s13 + $0x98] sm:$0xff]  ;;  %v276_v36 = vmul.f32 %v1282_v12, %v237_v29  ;;  %s746_s19 = scalar_lea.sflag [#allocation4], %s1262_s30  ;;  %s1037_s25 = scalar_lea.vmem %s1468_s29, 8192 }
  0x50   : > { %492 = vmatprep.subr.bf16.mxu0 %v965_v5  ;;  %883 = vmatprep.subr.bf16.mxu1 %v965_v5  ;;  %v328_v26 = vadd.f32 %v1292_v19, %v289_v20  ;;  %v329_v27 = vadd.f32 %v1292_v19, %v290_v21  ;;  %v979_v31 = vld [vmem:[#allocation5 + $0x10] ss:$8 sps:$4 sm:$0xff]   ;;  %v980_v33 = vld [vmem:[#allocation5 + $0x4] ss:$8 sps:$4 sm:$0xff]   ;;  %v291_v37 = vmul.f32 %v1282_v12, %v252_v30  ;;  %v982_v42 = vld [vmem:[#allocation5] ss:$8 sps:$4 sm:$0xff]   ;;  %p1038_p3 = scmp.ne.s32.totalorder %s1468_s29, %s1037_s25 }
  0x51   : > { %v344_v34 = vmax.f32 %v312_v24, 0.0  ;;  %v345_v38 = vmax.f32 %v313_v25, 0.0  ;;  %v292_v41 = vmul.f32 %v1282_v12, %v253_v32  ;;  %v314_v43 = vadd.f32 %v1292_v19, %v275_v35  ;;  %v238_v49 = vld [vmem:[%s1266_s13 + $0x20] sm:$0xff]  ;;  %v239_v50 = vld [vmem:[%s1266_s13 + $0x28] sm:$0xff]  ;;  %v240_v4 = vld [vmem:[%s1266_s13 + $0x30] sm:$0xff]  ;;  %p1535_p11 = scmp.ne.s32.totalorder %s1529_s10, 0 }
  0x52   : > { %v360_v39 = vmax.f32 %v328_v26, 0.0  ;;  %v361_v40 = vmax.f32 %v329_v27, 0.0  ;;  %v315_v44 = vadd.f32 %v1292_v19, %v276_v36  ;;  %v330_v45 = vadd.f32 %v1292_v19, %v291_v37  ;;  %v254_v51 = vld [vmem:[%s1266_s13 + $0xa0] sm:$0xff]  ;;  %v255_v52 = vld [vmem:[%s1266_s13 + $0xa8] sm:$0xff]  ;;  %v241_v5 = vld [vmem:[%s1266_s13 + $0x38] sm:$0xff]  ;;  %s1112_s7 = smov [#allocation7]  }
  0x53   : > { %493 = vmatpush1.bf16.msra.mxu0 %v967_v6  ;;  %891 = vmatpush1.bf16.msra.mxu1 %v967_v6  ;;  %v376_v46 = vpack.c.bf16 %v345_v38, %v344_v34  ;;  %v331_v48 = vadd.f32 %v1292_v19, %v292_v41  ;;  %v346_v53 = vmax.f32 %v314_v43, 0.0  ;;  %v277_v56 = vmul.f32 %v1282_v12, %v238_v49  ;;  %v256_v6 = vld [vmem:[%s1266_s13 + $0xb0] sm:$0xff]  ;;  %v242_v24 = vld [vmem:[%s1266_s13 + $0x40] sm:$0xff]  ;;  %v243_v25 = vld [vmem:[%s1266_s13 + $0x48] sm:$0xff]  ;;  %p1039_p7 = pnand %p1038_p3, %p1535_p11  ;;  %s1041_s8 = sshll.u32 %s1112_s7, 4  ;;  %s1042_s8 = int_to_ptr.vmem [resolvable:$false] %s1041_s8 }
  0x54   : > { %494 = vmatprep.subr.bf16.mxu0 %v968_v7  ;;  %884 = vmatprep.subr.bf16.mxu1 %v968_v7  ;;  %v384_v47 = vpack.c.bf16 %v361_v40, %v360_v39  ;;  %v347_v54 = vmax.f32 %v315_v44, 0.0  ;;  %v362_v55 = vmax.f32 %v330_v45, 0.0  ;;  %v278_v58 = vmul.f32 %v1282_v12, %v239_v50  ;;  %v257_v7 = vld [vmem:[%s1266_s13 + $0xb8] sm:$0xff]  ;;  %v258_v26 = vld [vmem:[%s1266_s13 + $0xc0] sm:$0xff]  ;;  %v259_v27 = vld [vmem:[%s1266_s13 + $0xc8] sm:$0xff]  ;;  %s1043_s12 = scalar_lea.vmem %s1042_s8, 16384  ;;  %p1044_p10 = scmp.lt.s32.totalorder %s1468_s29, %s1042_s8 }
  0x55   : > { %v363_v57 = vmax.f32 %v331_v48, 0.0  ;;  %v293_v59 = vmul.f32 %v1282_v12, %v254_v51  ;;  %v294_v60 = vmul.f32 %v1282_v12, %v255_v52  ;;  %v316_v62 = vadd.f32 %v1292_v19, %v277_v56  ;;  %v245_v43 = vld [vmem:[%s1266_s13 + $0x58] sm:$0xff]  ;;  %v260_v44 = vld [vmem:[%s1266_s13 + $0xd0] sm:$0xff]  ;;  %p1040_p9 = pneg %p1039_p7  ;;  %p1045_p12 = scmp.lt.s32.totalorder %s1043_s12, %s1037_s25 }
  0x56   : > { %v377_v61 = vpack.c.bf16 %v347_v54, %v346_v53  ;;  %v317_v1 = vadd.f32 %v1292_v19, %v278_v58  ;;  %v295_v11 = vmul.f32 %v1282_v12, %v256_v6  ;;  %v281_v30 = vmul.f32 %v1282_v12, %v242_v24  ;;  %v261_v45 = vld [vmem:[%s1266_s13 + $0xd8] sm:$0xff] }
  0x57   : > { %495 = vmatpush1.bf16.msra.mxu0 %v970_v8  ;;  %892 = vmatpush1.bf16.msra.mxu1 %v970_v8  ;;  %v385_v63 = vpack.c.bf16 %v363_v57, %v362_v55  ;;  %v332_v2 = vadd.f32 %v1292_v19, %v293_v59  ;;  %v333_v3 = vadd.f32 %v1292_v19, %v294_v60  ;;  %v348_v8 = vmax.f32 %v316_v62, 0.0  ;;  %v246_v60 = vld [vmem:[%s1266_s13 + $0x60] sm:$0xff]  ;;  %p1046_p13 = por %p1045_p12, %p1044_p10 }
  0x58   : > { %496 = vmatprep.subr.bf16.mxu0 %v971_v9  ;;  %885 = vmatprep.subr.bf16.mxu1 %v971_v9  ;;  %v279_v9 = vmul.f32 %v1282_v12, %v240_v4  ;;  %v349_v13 = vmax.f32 %v317_v1, 0.0  ;;  %v297_v34 = vmul.f32 %v1282_v12, %v258_v26  ;;  %v298_v35 = vmul.f32 %v1282_v12, %v259_v27  ;;  %v262_v62 = vld [vmem:[%s1266_s13 + $0xe0] sm:$0xff] }
  0x59   : > { %v364_v14 = vmax.f32 %v332_v2, 0.0  ;;  %v365_v15 = vmax.f32 %v333_v3, 0.0  ;;  %v320_v36 = vadd.f32 %v1292_v19, %v281_v30  ;;  %v284_v49 = vmul.f32 %v1282_v12, %v245_v43  ;;  %p1047_p0 = pnand %p1046_p13, %p1040_p9 }
  0x5a   : > { %v318_v17 = vadd.f32 %v1292_v19, %v279_v9  ;;  %v378_v20 = vpack.c.bf16 %v349_v13, %v348_v8  ;;  %v336_v40 = vadd.f32 %v1292_v19, %v297_v34  ;;  %v337_v41 = vadd.f32 %v1292_v19, %v298_v35 }
  0x5b   : > { %497 = vmatpush1.bf16.msra.mxu0 %v973_v10  ;;  %893 = vmatpush1.bf16.msra.mxu1 %v973_v10  ;;  %v280_v10 = vmul.f32 %v1282_v12, %v241_v5  ;;  %v386_v21 = vpack.c.bf16 %v365_v15, %v364_v14  ;;  %v299_v52 = vmul.f32 %v1282_v12, %v260_v44 }
  0x5c   : > { %498 = vmatprep.subr.bf16.mxu0 %v974_v16  ;;  %886 = vmatprep.subr.bf16.mxu1 %v974_v16  ;;  %v296_v16 = vmul.f32 %v1282_v12, %v257_v7  ;;  %v350_v28 = vmax.f32 %v318_v17, 0.0  ;;  %v368_v50 = vmax.f32 %v336_v40, 0.0  ;;  %v369_v51 = vmax.f32 %v337_v41, 0.0  ;;  %v249_v17 = vld [vmem:[%s1266_s13 + $0x78] sm:$0xff] }
  0x5d   : > { %v319_v18 = vadd.f32 %v1292_v19, %v280_v10  ;;  %v300_v53 = vmul.f32 %v1282_v12, %v261_v45  ;;  %v323_v57 = vadd.f32 %v1292_v19, %v284_v49  ;;  %v338_v58 = vadd.f32 %v1292_v19, %v299_v52 }
  0x5e   : > { %v388_v56 = vpack.c.bf16 %v369_v51, %v368_v50  ;;  %v285_v2 = vmul.f32 %v1282_v12, %v246_v60  ;;  %v301_v4 = vmul.f32 %v1282_v12, %v262_v62  ;;  %v288_v26 = vmul.f32 %v1282_v12, %v249_v17 }
  0x5f   : > { %499 = vmatpush1.bf16.msra.mxu0 %v976_v22  ;;  %894 = vmatpush1.bf16.msra.mxu1 %v976_v22  ;;  %v334_v22 = vadd.f32 %v1292_v19, %v295_v11  ;;  %v351_v29 = vmax.f32 %v319_v18, 0.0  ;;  %v339_v59 = vadd.f32 %v1292_v19, %v300_v53  ;;  %v355_v5 = vmax.f32 %v323_v57, 0.0  ;;  %v264_v18 = vld [vmem:[%s1266_s13 + $0xf0] sm:$0xff] }
  0x60   : > { %500 = vmatprep.subr.bf16.mxu0 %v977_v23  ;;  %887 = vmatprep.subr.bf16.mxu1 %v977_v23  ;;  %v335_v23 = vadd.f32 %v1292_v19, %v296_v16  ;;  %v370_v6 = vmax.f32 %v338_v58, 0.0  ;;  %v324_v9 = vadd.f32 %v1292_v19, %v285_v2  ;;  %v340_v11 = vadd.f32 %v1292_v19, %v301_v4  ;;  %v248_v16 = vld [vmem:[%s1266_s13 + $0x70] sm:$0xff] }
  0x61   : > { %v366_v32 = vmax.f32 %v334_v22, 0.0  ;;  %v379_v38 = vpack.c.bf16 %v351_v29, %v350_v28  ;;  %v371_v7 = vmax.f32 %v339_v59, 0.0  ;;  %v287_v24 = vmul.f32 %v1282_v12, %v248_v16 }
  0x62   : > { %v303_v27 = vmul.f32 %v1282_v12, %v264_v18 }
  0x63   : > { %501 = vmatpush1.bf16.msra.mxu0 %v979_v31  ;;  %895 = vmatpush1.bf16.msra.mxu1 %v979_v31  ;;  %v282_v31 = vmul.f32 %v1282_v12, %v243_v25  ;;  %v389_v14 = vpack.c.bf16 %v371_v7, %v370_v6  ;;  %v326_v30 = vadd.f32 %v1292_v19, %v287_v24 }
  0x64   : > { %502 = vmatprep.subr.bf16.mxu0 %v980_v33  ;;  %888 = vmatprep.subr.bf16.mxu1 %v980_v33  ;;  %v367_v33 = vmax.f32 %v335_v23, 0.0  ;;  %v372_v23 = vmax.f32 %v340_v11, 0.0 }
  0x65   : > { %v321_v37 = vadd.f32 %v1292_v19, %v282_v31  ;;  %v358_v35 = vmax.f32 %v326_v30, 0.0 }
  0x66   : > { %v387_v39 = vpack.c.bf16 %v367_v33, %v366_v32  ;;  %v327_v32 = vadd.f32 %v1292_v19, %v288_v26  ;;  %v342_v33 = vadd.f32 %v1292_v19, %v303_v27 }
  0x67   : > { %503 = vmatpush1.bf16.msra.mxu0 %v982_v42  ;;  %896 = vmatpush1.bf16.msra.mxu1 %v982_v42  ;;  %v244_v42 = vld [vmem:[%s1266_s13 + $0x50] sm:$0xff] }
  0x68   : > { %v283_v48 = vmul.f32 %v1282_v12, %v244_v42 }
  0x6a   : > { %521 = vmatmul.mubr.bf16.vlgmr.msra.gmra.mxu0 %v376_v46  ;;  %601 = vmatmul.mubr.bf16.vlgmr.msra.gmra.mxu1 %v384_v47  ;;  %v352_v46 = vmax.f32 %v320_v36, 0.0  ;;  %v353_v47 = vmax.f32 %v321_v37, 0.0  ;;  %v322_v55 = vadd.f32 %v1292_v19, %v283_v48  ;;  %v359_v36 = vmax.f32 %v327_v32, 0.0 }
  0x6b   : > { %530 = vmatprep.mubr.bf16.mxu0 %v1111_v0  ;;  %610 = vmatprep.mubr.bf16.mxu1 %v1111_v0 }
  0x6c   : > { %v380_v54 = vpack.c.bf16 %v353_v47, %v352_v46  ;;  %v354_v1 = vmax.f32 %v322_v55, 0.0 }
  0x6e   : > { %v381_v13 = vpack.c.bf16 %v355_v5, %v354_v1 }
  0x72   : > { %531 = vmatmul.mubr.bf16.gmra.mxu0 %v377_v61  ;;  %611 = vmatmul.mubr.bf16.gmra.mxu1 %v385_v63  ;;  %v247_v61 = vld [vmem:[%s1266_s13 + $0x68] sm:$0xff] }
  0x73   : > { %540 = vmatprep.mubr.bf16.mxu0 %v1111_v0  ;;  %620 = vmatprep.mubr.bf16.mxu1 %v1111_v0  ;;  %v263_v63 = vld [vmem:[%s1266_s13 + $0xe8] sm:$0xff]  ;;  %v286_v3 = vmul.f32 %v1282_v12, %v247_v61 }
  0x74   : > { %v302_v8 = vmul.f32 %v1282_v12, %v263_v63 }
  0x75   : > { %v325_v10 = vadd.f32 %v1292_v19, %v286_v3 }
  0x76   : > { %v341_v15 = vadd.f32 %v1292_v19, %v302_v8 }
  0x77   : > { %v357_v22 = vmax.f32 %v325_v10, 0.0 }
  0x78   : > { %v373_v25 = vmax.f32 %v341_v15, 0.0 }
  0x7a   : > { %541 = vmatmul.mubr.bf16.gmra.mxu0 %v378_v20  ;;  %621 = vmatmul.mubr.bf16.gmra.mxu1 %v386_v21  ;;  %v265_v20 = vld [vmem:[%s1266_s13 + $0xf8] sm:$0xff]  ;;  %v356_v21 = vmax.f32 %v324_v9, 0.0  ;;  %v390_v31 = vpack.c.bf16 %v373_v25, %v372_v23 }
  0x7b   : > { %550 = vmatprep.mubr.bf16.mxu0 %v1111_v0  ;;  %630 = vmatprep.mubr.bf16.mxu1 %v1111_v0  ;;  %v304_v28 = vmul.f32 %v1282_v12, %v265_v20  ;;  %v374_v12 = vmax.f32 %v342_v33, 0.0 }
  0x7c   : > { %v382_v29 = vpack.c.bf16 %v357_v22, %v356_v21 }
  0x7d   : > { %v343_v34 = vadd.f32 %v1292_v19, %v304_v28 }
  0x7f   : > { %v375_v37 = vmax.f32 %v343_v34, 0.0 }
  0x82   : > { %551 = vmatmul.mubr.bf16.gmra.mxu0 %v379_v38  ;;  %631 = vmatmul.mubr.bf16.gmra.mxu1 %v387_v39  ;;  %v383_v38 = vpack.c.bf16 %v359_v36, %v358_v35  ;;  %v391_v39 = vpack.c.bf16 %v375_v37, %v374_v12 }
  0x83   : > { %560 = vmatprep.mubr.bf16.mxu0 %v1111_v0  ;;  %640 = vmatprep.mubr.bf16.mxu1 %v1111_v0 }
  0x8a   : > { %561 = vmatmul.mubr.bf16.gmra.mxu0 %v380_v54  ;;  %641 = vmatmul.mubr.bf16.gmra.mxu1 %v388_v56 }
  0x8b   : > { %570 = vmatprep.mubr.bf16.mxu0 %v1111_v0  ;;  %650 = vmatprep.mubr.bf16.mxu1 %v1111_v0 }
  0x92   : > { %571 = vmatmul.mubr.bf16.gmra.mxu0 %v381_v13  ;;  %651 = vmatmul.mubr.bf16.gmra.mxu1 %v389_v14 }
  0x93   : > { %580 = vmatprep.mubr.bf16.mxu0 %v1111_v0  ;;  %660 = vmatprep.mubr.bf16.mxu1 %v1111_v0 }
  0x9a   : > { %581 = vmatmul.mubr.bf16.gmra.mxu0 %v382_v29  ;;  %661 = vmatmul.mubr.bf16.gmra.mxu1 %v390_v31 }
  0x9b   : > { %590 = vmatprep.mubr.bf16.mxu0 %v1111_v0  ;;  %670 = vmatprep.mubr.bf16.mxu1 %v1111_v0 }
  0xa2   : > { %591 = vmatmul.mubr.bf16.gmra.mxu0 %v383_v38  ;;  %671 = vmatmul.mubr.bf16.gmra.mxu1 %v391_v39 }
 0x12a   : > { %v522_v40 = vpop.f32.mrf.mxu0  ;;  %v602_v41 = vpop.f32.mrf.mxu1 }
 0x12b   : > { %681 = vst [vmem:[%s1399_s26] sm:$0xff] %v522_v40  ;;  %713 = vst [vmem:[%s1399_s26 + $0x100] sm:$0xff] %v602_v41 }
 0x12c   : > { %v524_v0 = vpop.f32.mrf.mxu0  ;;  %v604_v19 = vpop.f32.mrf.mxu1 }
 0x12d   : > { %682 = vst [vmem:[%s1399_s26 + $0x8] sm:$0xff] %v524_v0  ;;  %714 = vst [vmem:[%s1399_s26 + $0x108] sm:$0xff] %v604_v19 }
 0x12e   : > { %v526_v42 = vpop.f32.mrf.mxu0  ;;  %v606_v43 = vpop.f32.mrf.mxu1 }
 0x12f   : > { %683 = vst [vmem:[%s1399_s26 + $0x10] sm:$0xff] %v526_v42  ;;  %715 = vst [vmem:[%s1399_s26 + $0x110] sm:$0xff] %v606_v43 }
 0x130   : > { %v528_v44 = vpop.f32.mrf.mxu0  ;;  %v608_v45 = vpop.f32.mrf.mxu1 }
 0x131   : > { %684 = vst [vmem:[%s1399_s26 + $0x18] sm:$0xff] %v528_v44  ;;  %716 = vst [vmem:[%s1399_s26 + $0x118] sm:$0xff] %v608_v45 }
 0x132   : > { %v532_v46 = vpop.f32.mrf.mxu0  ;;  %v612_v47 = vpop.f32.mrf.mxu1 }
 0x133   : > { %685 = vst [vmem:[%s1399_s26 + $0x20] sm:$0xff] %v532_v46  ;;  %717 = vst [vmem:[%s1399_s26 + $0x120] sm:$0xff] %v612_v47 }
 0x134   : > { %v534_v48 = vpop.f32.mrf.mxu0  ;;  %v614_v49 = vpop.f32.mrf.mxu1 }
 0x135   : > { %686 = vst [vmem:[%s1399_s26 + $0x28] sm:$0xff] %v534_v48  ;;  %718 = vst [vmem:[%s1399_s26 + $0x128] sm:$0xff] %v614_v49 }
 0x136   : > { %v536_v50 = vpop.f32.mrf.mxu0  ;;  %v616_v51 = vpop.f32.mrf.mxu1 }
 0x137   : > { %687 = vst [vmem:[%s1399_s26 + $0x30] sm:$0xff] %v536_v50  ;;  %719 = vst [vmem:[%s1399_s26 + $0x130] sm:$0xff] %v616_v51 }
 0x138   : > { %v538_v52 = vpop.f32.mrf.mxu0  ;;  %v618_v53 = vpop.f32.mrf.mxu1 }
 0x139   : > { %688 = vst [vmem:[%s1399_s26 + $0x38] sm:$0xff] %v538_v52  ;;  %720 = vst [vmem:[%s1399_s26 + $0x138] sm:$0xff] %v618_v53 }
 0x13a   : > { %v542_v54 = vpop.f32.mrf.mxu0  ;;  %v622_v55 = vpop.f32.mrf.mxu1 }
 0x13b   : > { %689 = vst [vmem:[%s1399_s26 + $0x40] sm:$0xff] %v542_v54  ;;  %721 = vst [vmem:[%s1399_s26 + $0x140] sm:$0xff] %v622_v55 }
 0x13c   : > { %v544_v56 = vpop.f32.mrf.mxu0  ;;  %v624_v57 = vpop.f32.mrf.mxu1 }
 0x13d   : > { %690 = vst [vmem:[%s1399_s26 + $0x48] sm:$0xff] %v544_v56  ;;  %722 = vst [vmem:[%s1399_s26 + $0x148] sm:$0xff] %v624_v57 }
 0x13e   : > { %v546_v58 = vpop.f32.mrf.mxu0  ;;  %v626_v59 = vpop.f32.mrf.mxu1 }
 0x13f   : > { %691 = vst [vmem:[%s1399_s26 + $0x50] sm:$0xff] %v546_v58  ;;  %723 = vst [vmem:[%s1399_s26 + $0x150] sm:$0xff] %v626_v59 }
 0x140   : > { %v548_v60 = vpop.f32.mrf.mxu0  ;;  %v628_v61 = vpop.f32.mrf.mxu1 }
 0x141   : > { %692 = vst [vmem:[%s1399_s26 + $0x58] sm:$0xff] %v548_v60  ;;  %724 = vst [vmem:[%s1399_s26 + $0x158] sm:$0xff] %v628_v61 }
 0x142   : > { %v552_v62 = vpop.f32.mrf.mxu0  ;;  %v632_v63 = vpop.f32.mrf.mxu1 }
 0x143   : > { %693 = vst [vmem:[%s1399_s26 + $0x60] sm:$0xff] %v552_v62  ;;  %725 = vst [vmem:[%s1399_s26 + $0x160] sm:$0xff] %v632_v63 }
 0x144   : > { %v554_v1 = vpop.f32.mrf.mxu0  ;;  %v634_v2 = vpop.f32.mrf.mxu1 }
 0x145   : > { %694 = vst [vmem:[%s1399_s26 + $0x68] sm:$0xff] %v554_v1  ;;  %726 = vst [vmem:[%s1399_s26 + $0x168] sm:$0xff] %v634_v2 }
 0x146   : > { %v556_v3 = vpop.f32.mrf.mxu0  ;;  %v636_v4 = vpop.f32.mrf.mxu1 }
 0x147   : > { %695 = vst [vmem:[%s1399_s26 + $0x70] sm:$0xff] %v556_v3  ;;  %727 = vst [vmem:[%s1399_s26 + $0x170] sm:$0xff] %v636_v4 }
 0x148   : > { %v558_v5 = vpop.f32.mrf.mxu0  ;;  %v638_v6 = vpop.f32.mrf.mxu1 }
 0x149   : > { %696 = vst [vmem:[%s1399_s26 + $0x78] sm:$0xff] %v558_v5  ;;  %728 = vst [vmem:[%s1399_s26 + $0x178] sm:$0xff] %v638_v6 }
 0x14a   : > { %v562_v7 = vpop.f32.mrf.mxu0  ;;  %v642_v8 = vpop.f32.mrf.mxu1 }
 0x14b   : > { %697 = vst [vmem:[%s1399_s26 + $0x80] sm:$0xff] %v562_v7  ;;  %729 = vst [vmem:[%s1399_s26 + $0x180] sm:$0xff] %v642_v8 }
 0x14c   : > { %v564_v9 = vpop.f32.mrf.mxu0  ;;  %v644_v10 = vpop.f32.mrf.mxu1 }
 0x14d   : > { %698 = vst [vmem:[%s1399_s26 + $0x88] sm:$0xff] %v564_v9  ;;  %730 = vst [vmem:[%s1399_s26 + $0x188] sm:$0xff] %v644_v10 }
 0x14e   : > { %v566_v11 = vpop.f32.mrf.mxu0  ;;  %v646_v13 = vpop.f32.mrf.mxu1 }
 0x14f   : > { %699 = vst [vmem:[%s1399_s26 + $0x90] sm:$0xff] %v566_v11  ;;  %731 = vst [vmem:[%s1399_s26 + $0x190] sm:$0xff] %v646_v13 }
 0x150   : > { %v568_v14 = vpop.f32.mrf.mxu0  ;;  %v648_v15 = vpop.f32.mrf.mxu1 }
 0x151   : > { %700 = vst [vmem:[%s1399_s26 + $0x98] sm:$0xff] %v568_v14  ;;  %732 = vst [vmem:[%s1399_s26 + $0x198] sm:$0xff] %v648_v15 }
 0x152   : > { %v572_v16 = vpop.f32.mrf.mxu0  ;;  %v652_v17 = vpop.f32.mrf.mxu1 }
 0x153   : > { %701 = vst [vmem:[%s1399_s26 + $0xa0] sm:$0xff] %v572_v16  ;;  %733 = vst [vmem:[%s1399_s26 + $0x1a0] sm:$0xff] %v652_v17 }
 0x154   : > { %v574_v18 = vpop.f32.mrf.mxu0  ;;  %v654_v20 = vpop.f32.mrf.mxu1 }
 0x155   : > { %702 = vst [vmem:[%s1399_s26 + $0xa8] sm:$0xff] %v574_v18  ;;  %734 = vst [vmem:[%s1399_s26 + $0x1a8] sm:$0xff] %v654_v20 }
 0x156   : > { %v576_v21 = vpop.f32.mrf.mxu0  ;;  %v656_v22 = vpop.f32.mrf.mxu1 }
 0x157   : > { %703 = vst [vmem:[%s1399_s26 + $0xb0] sm:$0xff] %v576_v21  ;;  %735 = vst [vmem:[%s1399_s26 + $0x1b0] sm:$0xff] %v656_v22 }
 0x158   : > { %v578_v23 = vpop.f32.mrf.mxu0  ;;  %v658_v24 = vpop.f32.mrf.mxu1 }
 0x159   : > { %704 = vst [vmem:[%s1399_s26 + $0xb8] sm:$0xff] %v578_v23  ;;  %736 = vst [vmem:[%s1399_s26 + $0x1b8] sm:$0xff] %v658_v24 }
 0x15a   : > { %v582_v25 = vpop.f32.mrf.mxu0  ;;  %v662_v26 = vpop.f32.mrf.mxu1 }
 0x15b   : > { %705 = vst [vmem:[%s1399_s26 + $0xc0] sm:$0xff] %v582_v25  ;;  %737 = vst [vmem:[%s1399_s26 + $0x1c0] sm:$0xff] %v662_v26 }
 0x15c   : > { %v584_v27 = vpop.f32.mrf.mxu0  ;;  %v664_v28 = vpop.f32.mrf.mxu1 }
 0x15d   : > { %706 = vst [vmem:[%s1399_s26 + $0xc8] sm:$0xff] %v584_v27  ;;  %738 = vst [vmem:[%s1399_s26 + $0x1c8] sm:$0xff] %v664_v28 }
 0x15e   : > { %v586_v29 = vpop.f32.mrf.mxu0  ;;  %v666_v30 = vpop.f32.mrf.mxu1 }
 0x15f   : > { %707 = vst [vmem:[%s1399_s26 + $0xd0] sm:$0xff] %v586_v29  ;;  %739 = vst [vmem:[%s1399_s26 + $0x1d0] sm:$0xff] %v666_v30 }
 0x160   : > { %v588_v31 = vpop.f32.mrf.mxu0  ;;  %v668_v32 = vpop.f32.mrf.mxu1 }
 0x161   : > { %708 = vst [vmem:[%s1399_s26 + $0xd8] sm:$0xff] %v588_v31  ;;  %740 = vst [vmem:[%s1399_s26 + $0x1d8] sm:$0xff] %v668_v32 }
 0x162   : > { %v592_v33 = vpop.f32.mrf.mxu0  ;;  %v672_v34 = vpop.f32.mrf.mxu1 }
 0x163   : > { %709 = vst [vmem:[%s1399_s26 + $0xe0] sm:$0xff] %v592_v33  ;;  %741 = vst [vmem:[%s1399_s26 + $0x1e0] sm:$0xff] %v672_v34 }
 0x164   : > { %v594_v35 = vpop.f32.mrf.mxu0  ;;  %v674_v36 = vpop.f32.mrf.mxu1 }
 0x165   : > { %710 = vst [vmem:[%s1399_s26 + $0xe8] sm:$0xff] %v594_v35  ;;  %742 = vst [vmem:[%s1399_s26 + $0x1e8] sm:$0xff] %v674_v36 }
 0x166   : > { %v596_v12 = vpop.f32.mrf.mxu0  ;;  %v676_v37 = vpop.f32.mrf.mxu1 }
 0x167   : > { %711 = vst [vmem:[%s1399_s26 + $0xf0] sm:$0xff] %v596_v12  ;;  %743 = vst [vmem:[%s1399_s26 + $0x1f0] sm:$0xff] %v676_v37 }
 0x168   : > { %v598_v38 = vpop.f32.mrf.mxu0  ;;  %v678_v39 = vpop.f32.mrf.mxu1 }
 0x169   : > { %712 = vst [vmem:[%s1399_s26 + $0xf8] sm:$0xff] %v598_v38  ;;  %744 = vst [vmem:[%s1399_s26 + $0x1f8] sm:$0xff] %v678_v39 }
 0x16a   : > { %1050 = shalt.err (!%p1047_p0)
}
 0x16b   : > { %s1051_s13 = scalar_lea.hbm %s1466_s20, 8192  ;;  %s1055_s5 = scalar_lea.hbm %s1519_s4, 16384 }
 0x16c   : > { %p1052_p5 = scmp.ne.s32.totalorder %s1466_s20, %s1051_s13  ;;  %p1056_p4 = scmp.lt.s32.totalorder %s1466_s20, %s1519_s4 }
 0x16d   : > { %p1057_p6 = scmp.lt.s32.totalorder %s1055_s5, %s1051_s13 }
 0x16e   : > { %p1053_p2 = pnand %p1052_p5, %p1535_p11 }
 0x16f   : > { %p1058_p8 = por %p1057_p6, %p1056_p4 }
 0x170   : > { %p1054_p1 = pneg %p1053_p2 }
 0x172   : > { %p1059_p3 = pnand %p1058_p8, %p1054_p1 }
 0x174   : > { %1062 = shalt.err (!%p1059_p3)
}
 0x175   : > { %s1113_s26 = smov 256   ;;  %s1114_s28 = smov 16  }
 0x176   : > { %903 = dma.vmem_to_hbm [thread:$0]  (%p1535_p11), %s1468_s29, 8192, %s1466_s20, %s746_s19, %s1113_s26, %s1113_s26, %s1114_s28  }
 0x177 PF: > { %s775_s14 = sand.u32 1, %s1093_s15   ;;  %p1536_p7 = scmp.ne.s32.totalorder %s1525_s22, 0 }
 0x178   : > { %p1537_p9 = scmp.ge.s32.totalorder %s1105_s18, 2  ;;  %s776_s11 = scalar_lea.sflag [#allocation4], %s775_s14 }
 0x17a   : > { %p914_p10 = pnand %p1537_p9, %p1536_p7 }
 0x17c   : > { %p915_p12 = pneg %p914_p10 }
 0x17e   : > { %1088 = dma.done.wait (%p915_p12), %s776_s11, 8192  }
 0x17f   : > { %1090 = vsyncadd (%p915_p12), %s776_s11, 4294959104  ;;  %p18_p13 = scmp.ge.s32.totalorder %s1194_s27, 4   ;;  %s1538_s15 = smov %s1097_s16 }
 0x180   : > { %s1539_s16 = smov %s1101_s17  ;;  %s1540_s17 = smov %s1214_s9 }
 0x181   : > { %s1541_s18 = smov %s1194_s27  ;;  %20 = sbr.rel (!%p18_p13) target bundleno = 6 (0x6), region = 85 }
 0x186   :  { %781 = vsyncpa [#allocation3], 1 }
 0x187   :  { %783 = vsyncpa [#allocation3 + $0x1], 1 }
 0x188   :  { %784 = vsyncpa [#allocation6], 1 }
 0x189   :  { %785 = vsyncpa [#allocation4], 1 }
 0x18a   :  { %787 = vsyncpa [#allocation4 + $0x1], 1 }

</bundles_post_ra>
